<compile_context>
chip_gen: v7x
topology: tpu7x:2x2x1
jax: 0.10.0
libtpu: 0.0.40
codegen_flags: <defaults>
</compile_context>

<pallas_src>
from functools import partial

import jax
import jax.numpy as jnp
from jax.experimental import pallas as pl
from jax.experimental.pallas import tpu as pltpu


# ----------------------------------------------------------------------------
# Kernel
# ----------------------------------------------------------------------------
def _cdc_kernel(x_ref, w_ref, o_ref, *, H, W, C_out):
    """x_ref: (tb, H+2, (W+2)*C_in)   lane-dense halo tile
       w_ref: ((W+2)*C_in, 3*W*C_out) banded (block-Toeplitz) folded weights
       o_ref: (tb, H, W*C_out)        lane-dense, unpadded output tile"""
    WCo = W * C_out
    tb = x_ref.shape[0]
    wmat = w_ref[...]                       # resident; reused by every image
    for b in range(tb):                     # tb is small and static (<= 16)
        # One MXU matmul gives every (kw, c_in) tap contribution for every
        # output pixel of image b; columns [kh*WCo : (kh+1)*WCo] hold band kh.
        c = jnp.dot(x_ref[b], wmat, preferred_element_type=jnp.float32)
        out = (c[0:H,             0:WCo] +
               c[1:H + 1,       WCo:2 * WCo] +
               c[2:H + 2,   2 * WCo:3 * WCo])
        o_ref[b] = out.astype(o_ref.dtype)


# ----------------------------------------------------------------------------
# Wrapper helpers
# ----------------------------------------------------------------------------
def _round_up(n, m):
    return -(-n // m) * m


def _tpu_vmem_capacity_bytes():
    """Best-effort VMEM capacity query; conservative (v7x-sized) fallback."""
    try:
        info = pltpu.get_tpu_info()
        cap = getattr(info, "vmem_capacity_bytes", None)
        if cap:
            return int(cap)
    except Exception:
        pass
    return 64 * 1024 * 1024


def _banded_weight(w_eff, W, dtype):
    """Build the ((W+2)*C_in, 3*W*C_out) block-Toeplitz matrix: column block
    (kh, w) holds w_eff[:, :, kh, kw] at rows [(w+kw)*C_in, (w+kw+1)*C_in)."""
    C_out, C_in = w_eff.shape[0], w_eff.shape[1]
    Kc, WCo = (W + 2) * C_in, W * C_out
    w_hw = jnp.transpose(w_eff.astype(jnp.float32), (2, 3, 1, 0))  # (3,3,Ci,Co)
    kh = jnp.arange(3).reshape(3, 1, 1, 1, 1)
    kw = jnp.arange(3).reshape(1, 3, 1, 1, 1)
    w_ = jnp.arange(W).reshape(1, 1, W, 1, 1)
    ci = jnp.arange(C_in).reshape(1, 1, 1, C_in, 1)
    co = jnp.arange(C_out).reshape(1, 1, 1, 1, C_out)
    shape5 = (3, 3, W, C_in, C_out)
    rows = jnp.broadcast_to((w_ + kw) * C_in + ci, shape5).reshape(-1)
    cols = jnp.broadcast_to(kh * WCo + w_ * C_out + co, shape5).reshape(-1)
    vals = jnp.broadcast_to(w_hw[:, :, None, :, :], shape5).reshape(-1)
    band = jnp.zeros((Kc, 3 * WCo), jnp.float32).at[rows, cols].set(vals)
    return band.astype(dtype)


# ----------------------------------------------------------------------------
# Forward
# ----------------------------------------------------------------------------
def conv2d_cd_forward(x_nchw, weight, theta=0.7, *,
                      compute_dtype=jnp.float32, target_rows=None):
    """x_nchw: (N, C_in, H, W); weight: (C_out, C_in, 3, 3); returns NCHW.

    compute_dtype: MXU operand dtype.  f32 (default) for exact parity with the
    PyTorch reference; bf16 recommended in production (accumulation stays f32).
    """
    x_nchw = jnp.asarray(x_nchw)
    weight = jnp.asarray(weight)
    N, C_in, H, W = x_nchw.shape
    C_out = weight.shape[0]
    assert weight.shape == (C_out, C_in, 3, 3), "3x3 kernels only"

    # --- fold the central-difference term into the centre tap (exact) --------
    if abs(float(theta)) >= 1e-8:
        w_eff = weight.at[:, :, 1, 1].add(-theta * weight.sum(axis=(2, 3)))
    else:
        w_eff = weight

    Kc, WCo = (W + 2) * C_in, W * C_out
    w_band = _banded_weight(w_eff, W, compute_dtype)

    # Lane-dense halo image: NHWC, 1-pixel spatial pad, W and C_in folded into
    # the lane axis.  Cast to compute_dtype BEFORE the relayout so the padded
    # copy is written (and the kernel streams it) at operand precision.
    xh = jnp.transpose(x_nchw.astype(compute_dtype), (0, 2, 3, 1))
    xh = jnp.pad(xh, ((0, 0), (1, 1), (1, 1), (0, 0)))
    xp = xh.reshape(N, H + 2, Kc)

    # --- generation-aware tile sizing ----------------------------------------
    vmem_cap = _tpu_vmem_capacity_bytes()            # 128 MiB v5e/v6e, 64 MiB v7x
    vmem_limit = min(3 * vmem_cap // 4, 96 * 1024 * 1024)
    budget = int(vmem_limit * 0.7)                   # headroom for Mosaic scratch
    if target_rows is None:
        target_rows = 4096 if vmem_cap >= (96 << 20) else 2048

    x_bytes = jnp.dtype(compute_dtype).itemsize
    sub = lambda n: _round_up(n, 8)
    lane = lambda n: _round_up(n, 128)

    def vmem_need(tb):
        in_b = 2 * tb * sub(H + 2) * lane(Kc) * x_bytes     # double-buffered x
        out_b = 2 * tb * sub(H) * lane(WCo) * 4             # double-buffered out
        w_b = 2 * sub(Kc) * lane(3 * WCo) * x_bytes         # resident banded weight
        c_b = 2 * sub(H + 2) * lane(3 * WCo) * 4            # matmul result slab + slack
        return in_b + out_b + w_b + c_b

    tb = max(1, min(N, 16, max(1, target_rows // (H * W))))
    while N % tb:
        tb -= 1
    while tb > 1 and vmem_need(tb) > budget:
        tb -= 1
        while N % tb:
            tb -= 1

    kernel = partial(_cdc_kernel, H=H, W=W, C_out=C_out)
    out = pl.pallas_call(
        kernel,
        out_shape=jax.ShapeDtypeStruct((N, H, WCo), jnp.float32),
        grid_spec=pltpu.PrefetchScalarGridSpec(
            num_scalar_prefetch=0,
            grid=(N // tb,),
            in_specs=[
                # lane-dense halo tile of x (tb images per step)
                pl.BlockSpec((tb, H + 2, Kc), lambda i: (i, 0, 0)),
                # banded folded weights; constant block index => fetched once
                pl.BlockSpec((Kc, 3 * WCo), lambda i: (0, 0)),
            ],
            out_specs=pl.BlockSpec((tb, H, WCo), lambda i: (i, 0, 0)),
        ),
        compiler_params=pltpu.CompilerParams(
            dimension_semantics=("parallel",),
            vmem_limit_bytes=vmem_limit,
        ),
    )(xp, w_band)

    # Free reshape (no lane padding to slice off) + single NCHW transpose.
    out = out.reshape(N, H, W, C_out)
    return jnp.transpose(out, (0, 3, 1, 2)).astype(x_nchw.dtype)


# ----------------------------------------------------------------------------
# Pure-JAX reference mirroring the PyTorch module
# ----------------------------------------------------------------------------
def _reference(x_nchw, weight, theta):
    dn = jax.lax.conv_dimension_numbers(x_nchw.shape, weight.shape,
                                        ("NCHW", "OIHW", "NCHW"))
    out_normal = jax.lax.conv_general_dilated(
        x_nchw, weight, window_strides=(1, 1), padding=((1, 1), (1, 1)),
        dimension_numbers=dn)
    k_diff = weight.sum(axis=(2, 3))[:, :, None, None]
    out_diff = jax.lax.conv_general_dilated(
        x_nchw, k_diff, window_strides=(1, 1), padding=((0, 0), (0, 0)),
        dimension_numbers=dn)
    return out_normal - theta * out_diff


if __name__ == "__main__":
    key = jax.random.PRNGKey(0)
    kx, kw = jax.random.split(key)

    N, C_in, C_out, H, W = 2, 4, 8, 16, 16
    theta = 0.7

    x = jax.random.normal(kx, (N, C_in, H, W), dtype=jnp.float32)
    # deterministic synthetic weights (nn.Conv2d(in=4, out=8, k=3), bias=False)
    weight = jax.random.normal(kw, (C_out, C_in, 3, 3), dtype=jnp.float32) * 0.1

    ref = _reference(x, weight, theta)

    # exact-precision path (f32 operands, f32 accumulation)
    out = jax.block_until_ready(conv2d_cd_forward(x, weight, theta))
    assert out.shape == (N, C_out, H, W)
    assert jnp.allclose(out, ref, atol=1e-4, rtol=1e-4), "f32 mismatch vs reference"

    # production path (bf16 operands on the MXU, f32 accumulation)
    out_bf16 = jax.block_until_ready(
        conv2d_cd_forward(x, weight, theta, compute_dtype=jnp.bfloat16))
    assert jnp.allclose(out_bf16, ref, atol=1e-1, rtol=5e-2), "bf16 mismatch vs reference"

    print("KERNEL_OK")
</pallas_src>

<mosaic_0001>
module attributes {stable_mosaic.version = 11 : i64} {
  func.func @_cdc_kernel(%arg0: i32, %arg1: memref<2x18x72xf32, #tpu.memory_space<vmem>>, %arg2: memref<72x384xf32, #tpu.memory_space<vmem>>, %arg3: memref<2x16x128xf32, #tpu.memory_space<vmem>>) attributes {dimension_semantics = [#tpu.dimension_semantics<parallel>], iteration_bounds = array<i64: 1>, scalar_prefetch = 0 : i64, scratch_operands = 0 : i64, tpu.core_type = #tpu.core_type<tc>, window_params = [{transform_indices = @transform_0, window_bounds = array<i64: 2, 18, 72>}, {pipeline_mode = #tpu.pipeline_mode<synchronous>, transform_indices = @transform_1, window_bounds = array<i64: 72, 384>}, {transform_indices = @transform_2, window_bounds = array<i64: 2, 16, 128>}]} {
    %c0 = arith.constant 0 : index
    %c0_0 = arith.constant 0 : index
    %0 = vector.load %arg2[%c0, %c0_0] : memref<72x384xf32, #tpu.memory_space<vmem>>, vector<72x384xf32>
    %c0_1 = arith.constant 0 : index
    %c0_2 = arith.constant 0 : index
    %c0_3 = arith.constant 0 : index
    %1 = vector.load %arg1[%c0_1, %c0_2, %c0_3] : memref<2x18x72xf32, #tpu.memory_space<vmem>>, vector<1x18x72xf32>
    %2 = vector.shape_cast %1 : vector<1x18x72xf32> to vector<18x72xf32>
    %cst = arith.constant dense<0.000000e+00> : vector<18x384xf32>
    %3 = tpu.matmul %2, %0, %cst {dimension_numbers = #tpu.dot_dimension_numbers<[1], [0], [0], [1], [0, 0, 1, 1], [], []>} : vector<18x72xf32>, vector<72x384xf32>, vector<18x384xf32> -> vector<18x384xf32>
    %4 = vector.extract_strided_slice %3 {offsets = [0, 0], sizes = [16, 128], strides = [1, 1]} : vector<18x384xf32> to vector<16x128xf32>
    %5 = vector.extract_strided_slice %3 {offsets = [1, 128], sizes = [16, 128], strides = [1, 1]} : vector<18x384xf32> to vector<16x128xf32>
    %6 = arith.addf %4, %5 : vector<16x128xf32>
    %7 = vector.extract_strided_slice %3 {offsets = [2, 256], sizes = [16, 128], strides = [1, 1]} : vector<18x384xf32> to vector<16x128xf32>
    %8 = arith.addf %6, %7 : vector<16x128xf32>
    %c0_4 = arith.constant 0 : index
    %c0_5 = arith.constant 0 : index
    %c0_6 = arith.constant 0 : index
    %9 = vector.load %arg3[%c0_4, %c0_5, %c0_6] : memref<2x16x128xf32, #tpu.memory_space<vmem>>, vector<1x16x128xf32>
    %10 = vector.shape_cast %9 : vector<1x16x128xf32> to vector<16x128xf32>
    %11 = vector.shape_cast %8 : vector<16x128xf32> to vector<1x16x128xf32>
    tpu.vector_store %arg3[%c0_4, %c0_5, %c0_6], %11 {strides = array<i32>} : memref<2x16x128xf32, #tpu.memory_space<vmem>>, vector<1x16x128xf32>,
    %c1 = arith.constant 1 : index
    %c0_7 = arith.constant 0 : index
    %c0_8 = arith.constant 0 : index
    %12 = vector.load %arg1[%c1, %c0_7, %c0_8] : memref<2x18x72xf32, #tpu.memory_space<vmem>>, vector<1x18x72xf32>
    %13 = vector.shape_cast %12 : vector<1x18x72xf32> to vector<18x72xf32>
    %cst_9 = arith.constant dense<0.000000e+00> : vector<18x384xf32>
    %14 = tpu.matmul %13, %0, %cst_9 {dimension_numbers = #tpu.dot_dimension_numbers<[1], [0], [0], [1], [0, 0, 1, 1], [], []>} : vector<18x72xf32>, vector<72x384xf32>, vector<18x384xf32> -> vector<18x384xf32>
    %15 = vector.extract_strided_slice %14 {offsets = [0, 0], sizes = [16, 128], strides = [1, 1]} : vector<18x384xf32> to vector<16x128xf32>
    %16 = vector.extract_strided_slice %14 {offsets = [1, 128], sizes = [16, 128], strides = [1, 1]} : vector<18x384xf32> to vector<16x128xf32>
    %17 = arith.addf %15, %16 : vector<16x128xf32>
    %18 = vector.extract_strided_slice %14 {offsets = [2, 256], sizes = [16, 128], strides = [1, 1]} : vector<18x384xf32> to vector<16x128xf32>
    %19 = arith.addf %17, %18 : vector<16x128xf32>
    %c1_10 = arith.constant 1 : index
    %c0_11 = arith.constant 0 : index
    %c0_12 = arith.constant 0 : index
    %20 = vector.load %arg3[%c1_10, %c0_11, %c0_12] : memref<2x16x128xf32, #tpu.memory_space<vmem>>, vector<1x16x128xf32>
    %21 = vector.shape_cast %20 : vector<1x16x128xf32> to vector<16x128xf32>
    %22 = vector.shape_cast %19 : vector<16x128xf32> to vector<1x16x128xf32>
    tpu.vector_store %arg3[%c1_10, %c0_11, %c0_12], %22 {strides = array<i32>} : memref<2x16x128xf32, #tpu.memory_space<vmem>>, vector<1x16x128xf32>,
    return
  }
  func.func @transform_0(%arg0: i32) -> (i32, i32, i32) {
    %c0_i32 = arith.constant 0 : i32
    %c0_i32_0 = arith.constant 0 : i32
    %c0_i32_1 = arith.constant 0 : i32
    return %arg0, %c0_i32, %c0_i32_0 : i32, i32, i32
  }
  func.func @transform_1(%arg0: i32) -> (i32, i32) {
    %c0_i32 = arith.constant 0 : i32
    %c0_i32_0 = arith.constant 0 : i32
    %c0_i32_1 = arith.constant 0 : i32
    return %c0_i32, %c0_i32_0 : i32, i32
  }
  func.func @transform_2(%arg0: i32) -> (i32, i32, i32) {
    %c0_i32 = arith.constant 0 : i32
    %c0_i32_0 = arith.constant 0 : i32
    %c0_i32_1 = arith.constant 0 : i32
    return %arg0, %c0_i32, %c0_i32_0 : i32, i32, i32
  }
}

</mosaic_0001>

<bundles_post_ra>
// kernel: tpu_custom_call.1
= control target key start
LH: loop header
LB: loop body
LE: loop exit
PB: predicated region body
PF: predicated region fallthrough
CT: control target
= control target key end

     0   :  { %7 = vsyncpa [#allocation3], 0  ;;  %s795_s0 = inlined_call_operand.vmem [shape: f32[2,18,72], index: 0, kind: input, shape index: {}]   ;;  %s796_s1 = inlined_call_operand.hbm [shape: f32[72,384], index: 1, kind: input, shape index: {}]   ;;  %s797_s2 = inlined_call_operand.hbm [shape: f32[2,16,128], index: 2, kind: output, shape index: {}]  }
   0x1   :  { %8 = vsyncpa [#allocation4], 0  ;;  %s681_s9 = smov [#allocation2]   ;;  %s633_s13 = scalar_lea.hbm %s796_s1, 3456 }
   0x2   :  { %s16_s10 = sshll.u32 %s681_s9, 4  ;;  %p634_p0 = scmp.ne.s32.totalorder %s796_s1, %s633_s13  ;;  %s17_s10 = int_to_ptr.vmem [resolvable:$true] %s16_s10 }
   0x3   :  { %p637_p1 = scmp.lt.u32.totalorder %s633_s13, %s796_s1 }
   0x5   :  { %p639_p2 = pnand %p637_p1, %p634_p0 }
   0x7   :  { %642 = shalt.err (!%p639_p2)
}
   0x8   :  { %s643_s18 = scalar_lea.vmem %s17_s10, 3456  ;;  %p648_p4 = scmp.lt.s32.totalorder %s17_s10, %s17_s10 }
   0x9   :  { %p644_p3 = scmp.ne.s32.totalorder %s17_s10, %s643_s18  ;;  %p649_p5 = scmp.lt.s32.totalorder %s643_s18, %s643_s18 }
   0xb   :  { %p650_p6 = por %p649_p5, %p648_p4 }
   0xd   :  { %p651_p7 = pnand %p650_p6, %p644_p3 }
   0xf   :  { %654 = shalt.err (!%p651_p7)
}
  0x10   :  { %s682_s19 = smov 384   ;;  %s683_s20 = smov 24  }
  0x11   :  { %22 = dma.hbm_to_vmem [thread:$0]  %s796_s1, 3456, %s17_s10, [#allocation3], %s682_s19, %s682_s19, %s683_s20  }
  0x12   :  { %677 = dma.done.wait [#allocation3], 3456  }
  0x13   :  { %678 = vsyncadd [#allocation3], 4294963840  ;;  %v684_v0 = vmov 0.0|0.0   ;;  %v685_v1 = vmov 0.0   ;;  %vm686_vm0 = vmmov 0   ;;  %v27_v2 = vld [vmem:[#allocation2 + $0x8] sm:$0xff] }
  0x14   :  { %584 = vmatprep.subr.bf16.mxu1 %v684_v0  ;;  %130 = vmatprep.mubr.f32.mxu0 %v685_v1  ;;  %v30_v3 = vld [vmem:[#allocation2 + $0x20] sm:$0xff]  ;;  %v29_v6 = vld [vmem:[#allocation2 + $0x18] sm:$0xff]  ;;  %v28_v7 = vld [vmem:[#allocation2 + $0x10] sm:$0xff]  ;;  %vm56_vm1 = vcmask 588800   ;;  %vm244_vm2 = vcmask 1045504   ;;  %vm231_vm3 = vcmask 1046528  }
  0x15   :  { %532 = vmatprep.mubr.msk.f32.mxu1 %vm686_vm0, %v685_v1  ;;  %v26_v4 = vld [vmem:[#allocation2] sm:$0xff]  ;;  %v568_v5 = vpack.c.bf16 %v30_v3, %v27_v2  ;;  %v31_v8 = vld [vmem:[#allocation2 + $0x28] sm:$0xff]  ;;  %v33_v11 = vld [vmem:[#allocation2 + $0x38] sm:$0xff] }
  0x16   :  { %v570_v9 = vpack.c.bf16 %v29_v6, %v26_v4  ;;  %v585_v10 = vpack.c.bf16 %v31_v8, %v28_v7  ;;  %v36_v12 = vld [vmem:[#allocation2 + $0x50] sm:$0xff]  ;;  %v35_v15 = vld [vmem:[#allocation2 + $0x48] sm:$0xff]  ;;  %v34_v16 = vld [vmem:[#allocation2 + $0x40] sm:$0xff] }
  0x17   :  { %v32_v13 = vld [vmem:[#allocation2 + $0x30] sm:$0xff]  ;;  %569 = vmatprep.subr.bf16.mxu0 %v568_v5  ;;  %v572_v14 = vpack.c.bf16 %v36_v12, %v33_v11  ;;  %v37_v17 = vld [vmem:[#allocation2 + $0x58] sm:$0xff]  ;;  %v39_v20 = vld [vmem:[#allocation2 + $0x68] sm:$0xff] }
  0x18   :  { %571 = vmatpush1.bf16.msra.mxu0 %v570_v9  ;;  %586 = vmatpush3.bf16.msra.mxu1 %v585_v10  ;;  %v574_v18 = vpack.c.bf16 %v35_v15, %v32_v13  ;;  %v588_v19 = vpack.c.bf16 %v37_v17, %v34_v16  ;;  %v42_v21 = vld [vmem:[#allocation2 + $0x80] sm:$0xff]  ;;  %v41_v24 = vld [vmem:[#allocation2 + $0x78] sm:$0xff]  ;;  %v40_v25 = vld [vmem:[#allocation2 + $0x70] sm:$0xff] }
  0x19   :  { %v38_v22 = vld [vmem:[#allocation2 + $0x60] sm:$0xff]  ;;  %573 = vmatprep.subr.bf16.mxu0 %v572_v14  ;;  %587 = vmatprep.subr.bf16.mxu1 %v684_v0  ;;  %v576_v23 = vpack.c.bf16 %v42_v21, %v39_v20  ;;  %v43_v26 = vld [vmem:[#allocation2 + $0x88] sm:$0xff]  ;;  %v45_v27 = vld [vmem:[#allocation2 + $0x98] sm:$0xff] }
  0x1a   :  { %v48_v28 = vld [vmem:[#allocation2 + $0xb0] sm:$0xff]  ;;  %v578_v29 = vpack.c.bf16 %v41_v24, %v38_v22  ;;  %v591_v30 = vpack.c.bf16 %v43_v26, %v40_v25  ;;  %v47_v33 = vld [vmem:[#allocation2 + $0xa8] sm:$0xff]  ;;  %v46_v34 = vld [vmem:[#allocation2 + $0xa0] sm:$0xff] }
  0x1b   :  { %v44_v31 = vld [vmem:[#allocation2 + $0x90] sm:$0xff]  ;;  %v580_v32 = vpack.c.bf16 %v48_v28, %v45_v27  ;;  %v49_v35 = vld [vmem:[#allocation2 + $0xb8] sm:$0xff]  ;;  %v51_v38 = vld [vmem:[#allocation2 + $0xc8] sm:$0xff] }
  0x1c   :  { %575 = vmatpush1.bf16.msra.mxu0 %v574_v18  ;;  %589 = vmatpush3.bf16.msra.mxu1 %v588_v19  ;;  %v582_v36 = vpack.c.bf16 %v47_v33, %v44_v31  ;;  %v594_v37 = vpack.c.bf16 %v49_v35, %v46_v34  ;;  %v50_v39 = vld [vmem:[#allocation2 + $0xc0] sm:$0xff]  ;;  %v52_v40 = vld [vmem:[#allocation2 + $0xd0] sm:$0xff]  ;;  %v54_v42 = vld [vmem:[%s795_s0 + $0x8] sm:$0xff] }
  0x1d   :  { %577 = vmatprep.subr.bf16.mxu0 %v576_v23  ;;  %590 = vmatprep.subr.bf16.mxu1 %v684_v0  ;;  %v53_v41 = vld [vmem:[%s795_s0] sm:$0xff]  ;;  %v55_v43 = vld [vmem:[%s795_s0 + $0x10] sm:$0x3]  ;;  %v481_v44 = vld [vmem:[%s795_s0 + $0x18] sm:$0xff] }
  0x1e   :  { %v482_v45 = vld [vmem:[%s795_s0 + $0x20] sm:$0xff]  ;;  %v483_v46 = vld [vmem:[%s795_s0 + $0x28] sm:$0x3]  ;;  %s687_s0 = smov [#allocation5]  }
  0x1f   :  { %s463_s6 = sshll.u32 %s687_s0, 4  ;;  %s464_s6 = int_to_ptr.vmem [resolvable:$true] %s463_s6 }
  0x20   :  { %579 = vmatpush1.bf16.msra.mxu0 %v578_v29  ;;  %592 = vmatpush3.bf16.msra.mxu1 %v591_v30  ;;  %s655_s7 = scalar_lea.vmem %s464_s6, 512  ;;  %p660_p9 = scmp.lt.s32.totalorder %s464_s6, %s464_s6 }
  0x21   :  { %581 = vmatprep.subr.bf16.mxu0 %v580_v32  ;;  %593 = vmatprep.subr.bf16.mxu1 %v684_v0  ;;  %p656_p8 = scmp.ne.s32.totalorder %s464_s6, %s655_s7  ;;  %p661_p10 = scmp.lt.s32.totalorder %s655_s7, %s655_s7 }
  0x23   :  { %p662_p11 = por %p661_p10, %p660_p9 }
  0x24   :  { %583 = vmatpush1.bf16.msra.mxu0 %v582_v36  ;;  %595 = vmatpush3.bf16.msra.mxu1 %v594_v37 }
  0x25   :  { %82 = vmatprep.subr.mxu0 %v51_v38  ;;  %530 = vmatprep.subr.mxu1 %v685_v1  ;;  %p663_p12 = pnand %p662_p11, %p656_p8 }
  0x28   :  { %83 = vmatpush1.msra.mxu0 %v50_v39  ;;  %531 = vmatpush3.msra.mxu1 %v52_v40 }
  0x29   :  { %475 = vmatmul.mubr.msk.f32.vlgmr.msra.gmra.mrb[0].mxu0 %vm56_vm1, %v53_v41  ;;  %533 = vmatmul.mubr.msk.f32.vlgmr.msra.gmra.mrb[0].mxu1 %vm56_vm1, %v53_v41 }
  0x2a   :  { %597 = vmatprep.subr.bf16.mxu0 %v568_v5  ;;  %612 = vmatprep.subr.bf16.mxu1 %v684_v0 }
  0x2b   :  { %599 = vmatpush1.bf16.msra.mxu0 %v570_v9  ;;  %614 = vmatpush3.bf16.msra.mxu1 %v585_v10 }
  0x2c   :  { %136 = vmatprep.mubr.f32.mxu0 %v685_v1  ;;  %535 = vmatprep.mubr.msk.f32.mxu1 %vm686_vm0, %v685_v1 }
  0x2d   :  { %476 = vmatmul.mubr.msk.f32.gmra.mrb[2].mxu0 %vm56_vm1, %v54_v42  ;;  %536 = vmatmul.mubr.msk.f32.gmra.mrb[2].mxu1 %vm56_vm1, %v54_v42 }
  0x2e   :  { %601 = vmatprep.subr.bf16.mxu0 %v572_v14  ;;  %615 = vmatprep.subr.bf16.mxu1 %v684_v0 }
  0x2f   :  { %603 = vmatpush1.bf16.msra.mxu0 %v574_v18  ;;  %617 = vmatpush3.bf16.msra.mxu1 %v588_v19 }
  0x30   :  { %142 = vmatprep.mubr.f32.mxu0 %v685_v1  ;;  %605 = vmatprep.subr.bf16.mxu0 %v576_v23 }
  0x31   :  { %477 = vmatmul.mubr.msk.f32.gmra.mrb[4].mxu0 %vm56_vm1, %v55_v43  ;;  %618 = vmatprep.subr.bf16.mxu1 %v684_v0 }
  0x32   :  { %538 = vmatprep.mubr.msk.f32.mxu1 %vm686_vm0, %v685_v1  ;;  %333 = vmatprep.mubr.f32.mxu0 %v685_v1 }
  0x33   :  { %607 = vmatpush1.bf16.msra.mxu0 %v578_v29  ;;  %620 = vmatpush3.bf16.msra.mxu1 %v591_v30 }
  0x34   :  { %539 = vmatmul.mubr.msk.f32.gmra.mrb[4].mxu1 %vm56_vm1, %v55_v43  ;;  %609 = vmatprep.subr.bf16.mxu0 %v580_v32 }
  0x35   :  { %621 = vmatprep.subr.bf16.mxu1 %v684_v0  ;;  %559 = vmatprep.mubr.msk.f32.mxu1 %vm686_vm0, %v685_v1 }
  0x37   :  { %611 = vmatpush1.bf16.msra.mxu0 %v582_v36  ;;  %623 = vmatpush3.bf16.msra.mxu1 %v594_v37 }
  0x38   :  { %285 = vmatprep.subr.mxu0 %v51_v38  ;;  %557 = vmatprep.subr.mxu1 %v685_v1 }
  0x3b   :  { %286 = vmatpush1.msra.mxu0 %v50_v39  ;;  %558 = vmatpush3.msra.mxu1 %v52_v40 }
  0x3c   :  { %484 = vmatmul.mubr.msk.f32.vlgmr.msra.gmra.mrb[6].mxu0 %vm56_vm1, %v481_v44  ;;  %560 = vmatmul.mubr.msk.f32.vlgmr.msra.gmra.mrb[6].mxu1 %vm56_vm1, %v481_v44 }
  0x3d   :  { %339 = vmatprep.mubr.f32.mxu0 %v685_v1  ;;  %562 = vmatprep.mubr.msk.f32.mxu1 %vm686_vm0, %v685_v1 }
  0x40   :  { %485 = vmatmul.mubr.msk.f32.gmra.mrb[8].mxu0 %vm56_vm1, %v482_v45  ;;  %563 = vmatmul.mubr.msk.f32.gmra.mrb[8].mxu1 %vm56_vm1, %v482_v45 }
  0x41   :  { %345 = vmatprep.mubr.f32.mxu0 %v685_v1  ;;  %565 = vmatprep.mubr.msk.f32.mxu1 %vm686_vm0, %v685_v1 }
  0x44   :  { %486 = vmatmul.mubr.msk.f32.gmra.mrb[10].mxu0 %vm56_vm1, %v483_v46  ;;  %566 = vmatmul.mubr.msk.f32.gmra.mrb[10].mxu1 %vm56_vm1, %v483_v46 }
  0xfc   :  { %v132_v47 = vpop.f32.mrb[0].mxu0  ;;  %v214_v48 = vpop.f32.mrb[0].mxu1 }
  0xfd   :  { %v134_v49 = vpop.f32.mrb[1].mxu0  ;;  %v534_v50 = vpop.f32.mrb[1].mxu1  ;;  %v245_v51 = vrot.slane %v214_v48, 2 }
  0xfe   :  { %v232_v57 = vrot.slane %v134_v49, 1 }
 0x100   :  { %v138_v52 = vpop.f32.mrb[2].mxu0  ;;  %v219_v53 = vpop.f32.mrb[2].mxu1 }
 0x101   :  { %v246_v54 = vrot.slane %v219_v53, 2  ;;  %v140_v55 = vpop.f32.mrb[3].mxu0  ;;  %v537_v56 = vpop.f32.mrb[3].mxu1 }
 0x102   :  { %v233_v58 = vrot.slane %v140_v55, 1 }
 0x103   :  { %v247_v59 = vsel %vm244_vm2, %v245_v51, %v246_v54 }
 0x104   :  { %v234_v60 = vsel %vm231_vm3, %v232_v57, %v233_v58  ;;  %v144_v61 = vpop.f32.mrb[4].mxu0 }
 0x105   :  { %v239_v62 = vadd.f32 %v234_v60, %v132_v47  ;;  %v145_v63 = vpop.f32.mrb[5].mxu0 }
 0x106   :  { %v235_v0 = vrot.slane %v145_v63, 1 }
 0x107   :  { %v252_v1 = vadd.f32 %v247_v59, %v239_v62  ;;  %v224_v2 = vpop.f32.mrb[4].mxu1 }
 0x108   :  { %v236_v3 = vsel %vm231_vm3, %v233_v58, %v235_v0  ;;  %v248_v4 = vrot.slane %v224_v2, 2  ;;  %v540_v5 = vpop.f32.mrb[5].mxu1 }
 0x109   :  { %254 = vst [vmem:[#allocation5] sm:$0xff] %v252_v1  ;;  %v240_v6 = vadd.f32 %v236_v3, %v138_v52 }
 0x10a   :  { %v249_v7 = vsel %vm244_vm2, %v246_v54, %v248_v4 }
 0x10b   :  { %v253_v8 = vadd.f32 %v249_v7, %v240_v6 }
 0x10d   :  { %255 = vst [vmem:[#allocation5 + $0x8] sm:$0xff] %v253_v8 }
 0x10f   :  { %v335_v9 = vpop.f32.mrb[6].mxu0  ;;  %v417_v10 = vpop.f32.mrb[6].mxu1 }
 0x110   :  { %v337_v11 = vpop.f32.mrb[7].mxu0  ;;  %v561_v12 = vpop.f32.mrb[7].mxu1  ;;  %v446_v13 = vrot.slane %v417_v10, 2 }
 0x111   :  { %v434_v19 = vrot.slane %v337_v11, 1 }
 0x113   :  { %v341_v14 = vpop.f32.mrb[8].mxu0  ;;  %v422_v15 = vpop.f32.mrb[8].mxu1 }
 0x114   :  { %v447_v16 = vrot.slane %v422_v15, 2  ;;  %v343_v17 = vpop.f32.mrb[9].mxu0  ;;  %v564_v18 = vpop.f32.mrb[9].mxu1 }
 0x115   :  { %v435_v20 = vrot.slane %v343_v17, 1 }
 0x116   :  { %v448_v21 = vsel %vm244_vm2, %v446_v13, %v447_v16 }
 0x117   :  { %v436_v22 = vsel %vm231_vm3, %v434_v19, %v435_v20  ;;  %v347_v23 = vpop.f32.mrb[10].mxu0  ;;  %v427_v24 = vpop.f32.mrb[10].mxu1 }
 0x118   :  { %v441_v25 = vadd.f32 %v436_v22, %v335_v9  ;;  %v449_v26 = vrot.slane %v427_v24, 2  ;;  %v348_v27 = vpop.f32.mrb[11].mxu0  ;;  %v567_v28 = vpop.f32.mrb[11].mxu1 }
 0x119   :  { %v437_v29 = vrot.slane %v348_v27, 1 }
 0x11a   :  { %v453_v30 = vadd.f32 %v448_v21, %v441_v25  ;;  %v450_v31 = vsel %vm244_vm2, %v447_v16, %v449_v26 }
 0x11b   :  { %v438_v32 = vsel %vm231_vm3, %v435_v20, %v437_v29 }
 0x11c   :  { %456 = vst [vmem:[#allocation5 + $0x10] sm:$0xff] %v453_v30  ;;  %v442_v33 = vadd.f32 %v438_v32, %v341_v14 }
 0x11e   :  { %v454_v34 = vadd.f32 %v450_v31, %v442_v33 }
 0x120   :  { %457 = vst [vmem:[#allocation5 + $0x18] sm:$0xff] %v454_v34 }
 0x121   :  { %666 = shalt.err (!%p663_p12)
}
 0x122   :  { %s667_s10 = scalar_lea.hbm %s797_s2, 512 }
 0x123   :  { %p668_p13 = scmp.ne.s32.totalorder %s797_s2, %s667_s10  ;;  %p671_p0 = scmp.lt.u32.totalorder %s667_s10, %s797_s2 }
 0x125   :  { %p673_p1 = pnand %p671_p0, %p668_p13 }
 0x127   :  { %676 = shalt.err (!%p673_p1)
}
 0x128   :  { %s688_s15 = smov 128   ;;  %s689_s16 = smov 8  }
 0x129   :  { %469 = dma.vmem_to_hbm [thread:$0]  %s464_s6, 512, %s797_s2, [#allocation4], %s688_s15, %s688_s15, %s689_s16  }
 0x12a   :  { %679 = dma.done.wait [#allocation4], 512  }
 0x12b   :  { %680 = vsyncadd [#allocation4], 4294966784 }
 0x12c   :  { %473 = vsyncpa [#allocation3], 1 }
 0x12d   :  { %474 = vsyncpa [#allocation4], 1 }

</bundles_post_ra>
